<compile_context>
chip_gen: v7x
topology: tpu7x:2x2x1
jax: 0.10.0
libtpu: 0.0.40
codegen_flags: <defaults>
</compile_context>

<pallas_src>
import functools

import jax
import jax.numpy as jnp
from jax.experimental import pallas as pl
from jax.experimental.pallas import tpu as pltpu


# --------------------------------------------------------------------------
# Kernel
# --------------------------------------------------------------------------
def _pool_project_kernel(hid_ref, mask_ref, w_ref, b_ref, out_ref,
                         acc_ref, cnt_ref, *, normalize):
    """Streaming masked-mean pool over S, then projection + bias (+ L2 norm).

    hid_ref : (tb, ts, H) bf16  token embeddings (streamed tile)
    mask_ref: (tb, 1, ts) f32   attention-mask tile (lane-dense)
    w_ref   : (H, H)      f32   projection weight
    b_ref   : (1, H)      f32   projection bias
    out_ref : (tb, 1, H)  f32   pooled (query) embedding
    acc_ref : (tb, 1, H)  f32   running masked sum   (VMEM scratch)
    cnt_ref : (tb, 1, 1)  f32   running mask count   (VMEM scratch)
    """
    s_idx = pl.program_id(1)

    @pl.when(s_idx == 0)
    def _init():
        acc_ref[...] = jnp.zeros_like(acc_ref)
        cnt_ref[...] = jnp.zeros_like(cnt_ref)

    m32 = mask_ref[...]                                   # (tb, 1, ts) f32
    # Masked sum over this ts chunk as a batched (1,ts)x(ts,H) MXU matmul.
    # bf16 operands (mask is exactly 0/1 in bf16), f32 accumulation -> exact
    # per-term and full-rate MXU on every generation (incl. v5e).
    acc_ref[...] += jnp.einsum(
        "bks,bsh->bkh", m32.astype(jnp.bfloat16), hid_ref[...],
        preferred_element_type=jnp.float32)               # (tb, 1, H)
    cnt_ref[...] += jnp.sum(m32, axis=2, keepdims=True)   # (tb, 1, 1)

    @pl.when(s_idx == pl.num_programs(1) - 1)
    def _finalize():
        eps = jnp.float32(1e-9)
        # Clamp so an all-padding row stays finite (reference would NaN here).
        inv_cnt = pl.reciprocal(jnp.maximum(cnt_ref[...], eps), approx=False)
        pooled = acc_ref[...] * inv_cnt                   # (tb, 1, H)

        # Single f32 projection per batch tile; pool-before-project is exact
        # for a linear head (bias * sum(m)/sum(m) == bias).  Kept in f32 so
        # the result matches the f32 reference head to ~1e-6.
        proj = jnp.dot(pooled, w_ref[...],
                       preferred_element_type=jnp.float32)  # (tb, 1, H)
        proj = proj + b_ref[...]

        if normalize:
            inv_norm = jax.lax.rsqrt(
                jnp.sum(proj * proj, axis=-1, keepdims=True) + eps)
            proj = proj * inv_norm

        out_ref[...] = proj.astype(out_ref.dtype)


# --------------------------------------------------------------------------
# Tiling / VMEM budgeting
# --------------------------------------------------------------------------
def _pad(x, m):
    return ((x + m - 1) // m) * m


def _vmem_tile_bytes(tb, ts, H):
    """Conservative VMEM footprint: double-buffered inputs/outputs + scratch."""
    hid = 2 * tb * _pad(ts, 8) * _pad(H, 128) * 2      # bf16 hidden stream
    msk = 2 * tb * 8 * _pad(ts, 128) * 4               # (tb,1,ts) f32 mask
    w = 2 * _pad(H, 8) * _pad(H, 128) * 4              # projection weight
    bias = 2 * 8 * _pad(H, 128) * 4
    out = 2 * tb * 8 * _pad(H, 128) * 4                # (tb,1,H) f32 output
    acc = tb * 8 * _pad(H, 128) * 4                    # accumulator scratch
    cnt = tb * 8 * 128 * 4
    return hid + msk + w + bias + out + acc + cnt


def _vmem_budget_bytes():
    """Per-generation budget: ~70% of physical VMEM with fixed headroom
    (v7x 64 MiB -> ~45 MiB; v5e/v6e 128 MiB -> ~90 MiB)."""
    cap = 64 << 20  # conservative fallback (v7x-sized)
    try:
        cap = int(pltpu.get_tpu_info().vmem_capacity_bytes)
    except Exception:
        pass
    return max(16 << 20, min((cap * 7) // 10, cap - (12 << 20)))


def _pick_tiles(B, S, H, budget):
    """Largest tiles that fit the VMEM budget.

    ts: full S, or a multiple of 128 dividing S (keeps the mask tile's lane
        axis dense and satisfies bf16 (16,128) packing on the hidden tile).
    tb: divisor of B, <= 64, and <= B//2 when B >= 2 so the 'parallel' batch
        axis spans both v7x TensorCores.
    """
    ts_cands = sorted({S} | {t for t in (1024, 512, 384, 256, 128)
                             if t < S and S % t == 0}, reverse=True)
    tb_cap = B if B < 2 else max(1, min(64, B // 2))
    tb_cands = sorted({d for d in range(1, B + 1)
                       if B % d == 0 and d <= tb_cap}, reverse=True)
    for ts in ts_cands:
        for tb in tb_cands:
            if _vmem_tile_bytes(tb, ts, H) <= budget:
                return tb, ts
    return tb_cands[-1], ts_cands[-1]


# --------------------------------------------------------------------------
# Parameters (synthetic encoder) and forward
# --------------------------------------------------------------------------
def init_params(key, vocab_size, hidden):
    k_emb, k_w, k_b = jax.random.split(key, 3)
    return {
        # bf16 embeddings: halves HBM streaming bytes for the memory-bound
        # pooling; the kernel accumulates in f32.
        "embedding": (jax.random.normal(k_emb, (vocab_size, hidden), jnp.float32)
                      * 0.02).astype(jnp.bfloat16),
        "W": jax.random.normal(k_w, (hidden, hidden), jnp.float32)
             * (1.0 / hidden ** 0.5),
        "b": jax.random.normal(k_b, (1, hidden), jnp.float32) * 0.01,
    }


def distiller_forward(input_ids, attention_mask, params, *, norm_query=True,
                      iter_stats=None, tb=None, ts=None):
    """Mirrors Distiller.forward: returns (qemb, iter_stats)."""
    if iter_stats is None:
        iter_stats = {}

    bsz = input_ids.shape[0]
    # labels = torch.arange(0, bsz) in the reference; computed, not returned.
    _labels = jnp.arange(bsz, dtype=jnp.int32)

    # Glue: bf16 embedding lookup (gather) stays in XLA -- see TODO in header.
    hidden = jnp.take(params["embedding"], input_ids, axis=0)    # (B,S,H) bf16
    B, S, H = hidden.shape

    # Lane-dense mask layout: (B, 1, S) f32, block (tb, 1, ts).
    mask_f = attention_mask.astype(jnp.float32).reshape(B, 1, S)

    budget = _vmem_budget_bytes()
    auto_tb, auto_ts = _pick_tiles(B, S, H, budget)
    tb = auto_tb if tb is None else tb
    ts = auto_ts if ts is None else ts
    assert B % tb == 0 and S % ts == 0, "tile sizes must divide (B, S)"

    need = _vmem_tile_bytes(tb, ts, H)
    vmem_limit = int(min(budget, max(8 << 20, (need * 5) // 4)))

    cost = pl.CostEstimate(
        flops=int(2 * B * S * H + 2 * B * H * H + 6 * B * H),
        transcendentals=int(2 * B),
        bytes_accessed=int(B * S * H * hidden.dtype.itemsize
                           + B * S * 4 + H * H * 4 + H * 4 + B * H * 4),
    )

    out3 = pl.pallas_call(
        functools.partial(_pool_project_kernel, normalize=norm_query),
        out_shape=jax.ShapeDtypeStruct((B, 1, H), jnp.float32),
        grid_spec=pltpu.PrefetchScalarGridSpec(
            num_scalar_prefetch=0,
            grid=(B // tb, S // ts),
            in_specs=[
                pl.BlockSpec((tb, ts, H), lambda b, s: (b, s, 0)),
                pl.BlockSpec((tb, 1, ts), lambda b, s: (b, 0, s)),
                # Constant index_map: weight/bias fetched once, stay resident.
                pl.BlockSpec((H, H), lambda b, s: (0, 0)),
                pl.BlockSpec((1, H), lambda b, s: (0, 0)),
            ],
            out_specs=pl.BlockSpec((tb, 1, H), lambda b, s: (b, 0, 0)),
            scratch_shapes=[
                pltpu.VMEM((tb, 1, H), jnp.float32),   # masked-sum accumulator
                pltpu.VMEM((tb, 1, 1), jnp.float32),   # mask-count accumulator
            ],
        ),
        compiler_params=pltpu.CompilerParams(
            dimension_semantics=("parallel", "arbitrary"),
            vmem_limit_bytes=vmem_limit,
        ),
        cost_estimate=cost,
    )(hidden, mask_f, params["W"], params["b"])

    return out3.reshape(B, H), iter_stats


# --------------------------------------------------------------------------
# Pure-JAX reference (original project-then-pool formulation)
# --------------------------------------------------------------------------
def _reference_forward(input_ids, attention_mask, params, *, norm_query=True):
    emb = params["embedding"].astype(jnp.float32)
    hidden = jnp.take(emb, input_ids, axis=0)                        # (B,S,H)
    x = jnp.einsum("bsh,hd->bsd", hidden, params["W"]) + params["b"][None, :, :]
    m = attention_mask.astype(jnp.float32)
    pooled = jnp.sum(x * m[..., None], axis=1) / jnp.sum(m, axis=1, keepdims=True)
    if norm_query:
        pooled = pooled / jnp.linalg.norm(pooled, axis=-1, keepdims=True)
    return pooled


if __name__ == "__main__":
    B, S, H, V = 2, 256, 128, 64

    key = jax.random.PRNGKey(0)
    k_ids, k_params = jax.random.split(key)

    params = init_params(k_params, V, H)
    input_ids = jax.random.randint(k_ids, (B, S), 0, V, dtype=jnp.int32)
    # Left-aligned attention mask: first sequence has 37 pad tokens.
    seq_lens = jnp.array([[S - 37], [S]], dtype=jnp.int32)
    attention_mask = (jnp.arange(S, dtype=jnp.int32)[None, :] < seq_lens
                      ).astype(jnp.int32)

    ref = _reference_forward(input_ids, attention_mask, params, norm_query=True)

    # 1) Budget-driven auto tiles.
    qemb, iter_stats = distiller_forward(input_ids, attention_mask, params,
                                         norm_query=True)
    qemb = jax.block_until_ready(qemb)
    assert qemb.shape == (B, H)
    assert jnp.allclose(qemb, ref, atol=1e-4, rtol=1e-4), "mismatch (auto tiles)"

    # 2) Forced ts=128 to exercise the multi-step S reduction (grid = (2, 2)).
    qemb2, _ = distiller_forward(input_ids, attention_mask, params,
                                 norm_query=True, ts=128)
    qemb2 = jax.block_until_ready(qemb2)
    assert jnp.allclose(qemb2, ref, atol=1e-4, rtol=1e-4), "mismatch (ts=128)"

    print("KERNEL_OK")
</pallas_src>

<mosaic_0001>
module attributes {stable_mosaic.version = 11 : i64} {
  func.func @_pool_project_kernel(%arg0: i32, %arg1: i32, %arg2: memref<1x256x128xbf16, #tpu.memory_space<vmem>>, %arg3: memref<1x1x256xf32, #tpu.memory_space<vmem>>, %arg4: memref<128x128xf32, #tpu.memory_space<vmem>>, %arg5: memref<1x128xf32, #tpu.memory_space<vmem>>, %arg6: memref<1x1x128xf32, #tpu.memory_space<vmem>>, %arg7: memref<1x1x128xf32, #tpu.memory_space<vmem>>, %arg8: memref<1x1x1xf32, #tpu.memory_space<vmem>>) attributes {dimension_semantics = [#tpu.dimension_semantics<parallel>, #tpu.dimension_semantics<arbitrary>], iteration_bounds = array<i64: 2, 1>, scalar_prefetch = 0 : i64, scratch_operands = 2 : i64, tpu.core_type = #tpu.core_type<tc>, window_params = [{transform_indices = @transform_0, window_bounds = array<i64: 1, 256, 128>}, {transform_indices = @transform_1, window_bounds = array<i64: 1, 1, 256>}, {pipeline_mode = #tpu.pipeline_mode<synchronous>, transform_indices = @transform_2, window_bounds = array<i64: 128, 128>}, {pipeline_mode = #tpu.pipeline_mode<synchronous>, transform_indices = @transform_3, window_bounds = array<i64: 1, 128>}, {transform_indices = @transform_4, window_bounds = array<i64: 1, 1, 128>}]} {
    %c0_i32 = arith.constant 0 : i32
    %0 = arith.cmpi eq, %arg1, %c0_i32 : i32
    %1 = arith.extui %0 : i1 to i32
    %c0_i32_0 = arith.constant 0 : i32
    %2 = arith.cmpi ne, %1, %c0_i32_0 : i32
    scf.if %2 {
      %cst_21 = arith.constant 0.000000e+00 : f32
      %18 = vector.broadcast %cst_21 : f32 to vector<1x1x128xf32>
      %c0_22 = arith.constant 0 : index
      %c0_23 = arith.constant 0 : index
      %c0_24 = arith.constant 0 : index
      %19 = vector.load %arg7[%c0_22, %c0_23, %c0_24] : memref<1x1x128xf32, #tpu.memory_space<vmem>>, vector<1x1x128xf32>
      tpu.vector_store %arg7[%c0_22, %c0_23, %c0_24], %18 {strides = array<i32>} : memref<1x1x128xf32, #tpu.memory_space<vmem>>, vector<1x1x128xf32>,
      %cst_25 = arith.constant 0.000000e+00 : f32
      %20 = vector.broadcast %cst_25 : f32 to vector<1x1x1xf32>
      %c0_26 = arith.constant 0 : index
      %c0_27 = arith.constant 0 : index
      %c0_28 = arith.constant 0 : index
      %21 = vector.load %arg8[%c0_26, %c0_27, %c0_28] : memref<1x1x1xf32, #tpu.memory_space<vmem>>, vector<1x1x1xf32>
      tpu.vector_store %arg8[%c0_26, %c0_27, %c0_28], %20 {strides = array<i32>} : memref<1x1x1xf32, #tpu.memory_space<vmem>>, vector<1x1x1xf32>,
    } else {
    }
    %c0 = arith.constant 0 : index
    %c0_1 = arith.constant 0 : index
    %c0_2 = arith.constant 0 : index
    %3 = vector.load %arg3[%c0, %c0_1, %c0_2] : memref<1x1x256xf32, #tpu.memory_space<vmem>>, vector<1x1x256xf32>
    %c0_3 = arith.constant 0 : index
    %c0_4 = arith.constant 0 : index
    %c0_5 = arith.constant 0 : index
    %4 = vector.load %arg7[%c0_3, %c0_4, %c0_5] : memref<1x1x128xf32, #tpu.memory_space<vmem>>, vector<1x1x128xf32>
    %5 = arith.truncf %3 : vector<1x1x256xf32> to vector<1x1x256xbf16>
    %c0_6 = arith.constant 0 : index
    %c0_7 = arith.constant 0 : index
    %c0_8 = arith.constant 0 : index
    %6 = vector.load %arg2[%c0_6, %c0_7, %c0_8] : memref<1x256x128xbf16, #tpu.memory_space<vmem>>, vector<1x256x128xbf16>
    "tpu.trace_start"() <{level = 10 : i32, message = "bks,bsh->bkh"}> : () -> ()
    %cst = arith.constant dense<0.000000e+00> : vector<1x1x128xf32>
    %7 = tpu.matmul %5, %6, %cst {dimension_numbers = #tpu.dot_dimension_numbers<[2], [1], [1], [2], [0, 0, 0, 1, 1, 2], [0], [0]>} : vector<1x1x256xbf16>, vector<1x256x128xbf16>, vector<1x1x128xf32> -> vector<1x1x128xf32>
    "tpu.trace_stop"() : () -> ()
    %8 = arith.addf %4, %7 : vector<1x1x128xf32>
    %c0_9 = arith.constant 0 : index
    %c0_10 = arith.constant 0 : index
    %c0_11 = arith.constant 0 : index
    %9 = vector.load %arg7[%c0_9, %c0_10, %c0_11] : memref<1x1x128xf32, #tpu.memory_space<vmem>>, vector<1x1x128xf32>
    tpu.vector_store %arg7[%c0_9, %c0_10, %c0_11], %8 {strides = array<i32>} : memref<1x1x128xf32, #tpu.memory_space<vmem>>, vector<1x1x128xf32>,
    %c0_12 = arith.constant 0 : index
    %c0_13 = arith.constant 0 : index
    %c0_14 = arith.constant 0 : index
    %10 = vector.load %arg8[%c0_12, %c0_13, %c0_14] : memref<1x1x1xf32, #tpu.memory_space<vmem>>, vector<1x1x1xf32>
    %cst_15 = arith.constant dense<0.000000e+00> : vector<1x1xf32>
    %11 = vector.multi_reduction <add>, %3, %cst_15 [2] : vector<1x1x256xf32> to vector<1x1xf32>
    %12 = vector.shape_cast %11 : vector<1x1xf32> to vector<1x1x1xf32>
    %13 = arith.addf %10, %12 : vector<1x1x1xf32>
    %c0_16 = arith.constant 0 : index
    %c0_17 = arith.constant 0 : index
    %c0_18 = arith.constant 0 : index
    %14 = vector.load %arg8[%c0_16, %c0_17, %c0_18] : memref<1x1x1xf32, #tpu.memory_space<vmem>>, vector<1x1x1xf32>
    tpu.vector_store %arg8[%c0_16, %c0_17, %c0_18], %13 {strides = array<i32>} : memref<1x1x1xf32, #tpu.memory_space<vmem>>, vector<1x1x1xf32>,
    %c0_i32_19 = arith.constant 0 : i32
    %15 = arith.cmpi eq, %arg1, %c0_i32_19 : i32
    %16 = arith.extui %15 : i1 to i32
    %c0_i32_20 = arith.constant 0 : i32
    %17 = arith.cmpi ne, %16, %c0_i32_20 : i32
    scf.if %17 {
      %c0_21 = arith.constant 0 : index
      %c0_22 = arith.constant 0 : index
      %c0_23 = arith.constant 0 : index
      %18 = vector.load %arg8[%c0_21, %c0_22, %c0_23] : memref<1x1x1xf32, #tpu.memory_space<vmem>>, vector<1x1x1xf32>
      %cst_24 = arith.constant 9.99999971E-10 : f32
      %19 = vector.broadcast %cst_24 : f32 to vector<1x1x1xf32>
      %20 = arith.maximumf %18, %19 : vector<1x1x1xf32>
      %21 = tpu.reciprocal %20 : vector<1x1x1xf32> -> vector<1x1x1xf32>
      %c0_25 = arith.constant 0 : index
      %c0_26 = arith.constant 0 : index
      %c0_27 = arith.constant 0 : index
      %22 = vector.load %arg7[%c0_25, %c0_26, %c0_27] : memref<1x1x128xf32, #tpu.memory_space<vmem>>, vector<1x1x128xf32>
      %23 = vector.broadcast %21 : vector<1x1x1xf32> to vector<1x1x128xf32>
      %24 = arith.mulf %22, %23 : vector<1x1x128xf32>
      %c0_28 = arith.constant 0 : index
      %c0_29 = arith.constant 0 : index
      %25 = vector.load %arg4[%c0_28, %c0_29] : memref<128x128xf32, #tpu.memory_space<vmem>>, vector<128x128xf32>
      %cst_30 = arith.constant dense<0.000000e+00> : vector<1x1x128xf32>
      %26 = tpu.matmul %24, %25, %cst_30 {dimension_numbers = #tpu.dot_dimension_numbers<[2], [0], [0, 1], [1], [0, 0, 0, 1, 1, 1], [], []>} : vector<1x1x128xf32>, vector<128x128xf32>, vector<1x1x128xf32> -> vector<1x1x128xf32>
      %c0_31 = arith.constant 0 : index
      %c0_32 = arith.constant 0 : index
      %27 = vector.load %arg5[%c0_31, %c0_32] : memref<1x128xf32, #tpu.memory_space<vmem>>, vector<1x128xf32>
      %28 = vector.shape_cast %27 : vector<1x128xf32> to vector<1x1x128xf32>
      %29 = arith.addf %26, %28 : vector<1x1x128xf32>
      %30 = arith.mulf %29, %29 : vector<1x1x128xf32>
      %cst_33 = arith.constant dense<0.000000e+00> : vector<1x1xf32>
      %31 = vector.multi_reduction <add>, %30, %cst_33 [2] : vector<1x1x128xf32> to vector<1x1xf32>
      %32 = vector.shape_cast %31 : vector<1x1xf32> to vector<1x1x1xf32>
      %cst_34 = arith.constant 9.99999971E-10 : f32
      %33 = vector.broadcast %cst_34 : f32 to vector<1x1x1xf32>
      %34 = arith.addf %32, %33 : vector<1x1x1xf32>
      %35 = math.rsqrt %34 : vector<1x1x1xf32>
      %36 = vector.broadcast %35 : vector<1x1x1xf32> to vector<1x1x128xf32>
      %37 = arith.mulf %29, %36 : vector<1x1x128xf32>
      %c0_35 = arith.constant 0 : index
      %c0_36 = arith.constant 0 : index
      %c0_37 = arith.constant 0 : index
      %38 = vector.load %arg6[%c0_35, %c0_36, %c0_37] : memref<1x1x128xf32, #tpu.memory_space<vmem>>, vector<1x1x128xf32>
      tpu.vector_store %arg6[%c0_35, %c0_36, %c0_37], %37 {strides = array<i32>} : memref<1x1x128xf32, #tpu.memory_space<vmem>>, vector<1x1x128xf32>,
    } else {
    }
    return
  }
  func.func @transform_0(%arg0: i32, %arg1: i32) -> (i32, i32, i32) {
    %c0_i32 = arith.constant 0 : i32
    %c0_i32_0 = arith.constant 0 : i32
    return %arg0, %arg1, %c0_i32 : i32, i32, i32
  }
  func.func @transform_1(%arg0: i32, %arg1: i32) -> (i32, i32, i32) {
    %c0_i32 = arith.constant 0 : i32
    %c0_i32_0 = arith.constant 0 : i32
    return %arg0, %c0_i32, %arg1 : i32, i32, i32
  }
  func.func @transform_2(%arg0: i32, %arg1: i32) -> (i32, i32) {
    %c0_i32 = arith.constant 0 : i32
    %c0_i32_0 = arith.constant 0 : i32
    %c0_i32_1 = arith.constant 0 : i32
    return %c0_i32, %c0_i32_0 : i32, i32
  }
  func.func @transform_3(%arg0: i32, %arg1: i32) -> (i32, i32) {
    %c0_i32 = arith.constant 0 : i32
    %c0_i32_0 = arith.constant 0 : i32
    %c0_i32_1 = arith.constant 0 : i32
    return %c0_i32, %c0_i32_0 : i32, i32
  }
  func.func @transform_4(%arg0: i32, %arg1: i32) -> (i32, i32, i32) {
    %c0_i32 = arith.constant 0 : i32
    %c0_i32_0 = arith.constant 0 : i32
    %c0_i32_1 = arith.constant 0 : i32
    return %arg0, %c0_i32, %c0_i32_0 : i32, i32, i32
  }
}

</mosaic_0001>

<bundles_post_ra>
// kernel: tpu_custom_call.1
= control target key start
LH: loop header
LB: loop body
LE: loop exit
PB: predicated region body
PF: predicated region fallthrough
CT: control target
= control target key end

     0   :  { %s1476_s0 = inlined_call_operand.hbm [shape: bf16[2,256,128], index: 0, kind: input, shape index: {}]   ;;  %s1477_s1 = inlined_call_operand.hbm [shape: f32[2,1,256], index: 1, kind: input, shape index: {}]   ;;  %s1478_s2 = inlined_call_operand.hbm [shape: f32[128,128], index: 2, kind: input, shape index: {}]   ;;  %s1479_s3 = inlined_call_operand.vmem [shape: f32[1,128], index: 3, kind: input, shape index: {}]   ;;  %s1480_s4 = inlined_call_operand.hbm [shape: f32[2,1,128], index: 4, kind: output, shape index: {}]  }
   0x1   :  { %1486 = sst [smem:[#allocation17_spill]] %s1476_s0 }
   0x2   :  { %1487 = sst [smem:[#allocation18_spill]] %s1478_s2 }
   0x3   :  { %9 = vsyncpa [#allocation5], 0 }
   0x4   :  { %11 = vsyncpa [#allocation5 + $0x1], 0 }
   0x5   :  { %12 = vsyncpa [#allocation8], 0 }
   0x6   :  { %14 = vsyncpa [#allocation8 + $0x1], 0 }
   0x7   :  { %15 = vsyncpa [#allocation6], 0 }
   0x8   :  { %17 = vsyncpa [#allocation6 + $0x1], 0  ;;  %s1187_s15 = smov 0   ;;  %s1189_s16 = smov 0  }
   0x9   :  { %s1191_s17 = smov 0   ;;  %s1193_s18 = smov 0  }
   0xa   :  { %s1195_s19 = smov 0   ;;  %s1197_s20 = smov 0  }
   0xb LB: > { %s1218_s21 = sadd.s32 4294967295, %s1148_s20   ;;  %s730_s22 = sadd.s32 4294967294, %s1148_s20   ;;  %s1148_s20 = sphi %s1197_s20, %s23_s20   ;;  %s1144_s19 = sphi %s1195_s19, %s1514_s19   ;;  %s1140_s18 = sphi %s1193_s18, %s1513_s18   ;;  %s1136_s17 = sphi %s1191_s17, %s1512_s17   ;;  %s1132_s16 = sphi %s1189_s16, %s1511_s16   ;;  %s1128_s15 = sphi %s1187_s15, %s1510_s15  }
   0xc   : > { %p57_p0 = scmp.ne.s32.totalorder %s1132_s16, %s1128_s15  ;;  %p1481_p1 = scmp.eq.s32.totalorder %s1218_s21, 0 }
   0xd   : > { %p157_p3 = scmp.eq.s32.totalorder %s730_s22, 1  ;;  %p731_p5 = scmp.ge.s32.totalorder %s1148_s20, 1 }
   0xe   : > { %p1227_p4 = por %p1481_p1, %p57_p0  ;;  %p164_p7 = scmp.lt.s32.totalorder %s1148_s20, 3 }
   0xf   : > { %p1232_p6 = por %p157_p3, %p57_p0  ;;  %s1150_s26 = smov [#allocation9]  }
  0x10   : > { %s1488_s23 = scalar_select %p1227_p4, 1, 0 }
  0x11   : > { %s1489_s24 = scalar_select %p1232_p6, 1, 0 }
  0x12   : > { %p1237_p8 = pnand %p731_p5, %p164_p7  ;;  %s176_s27 = sshll.u32 %s1150_s26, 4  ;;  %s177_s27 = int_to_ptr.vmem [resolvable:$true] %s176_s27 }
  0x13   : > { %s35_s29 = sadd.s32 1, %s1144_s19  ;;  %s1492_s2 = sld [smem:[#allocation18_spill]] }
  0x14   : > { %s1490_s25 = scalar_select %p1237_p8, 1, 0 }
  0x15   : > { %p873_p9 = pneg %p1237_p8 }
  0x17   : > { %p1246_p11 = pnand %p873_p9, %p1481_p1 }
  0x19   : > { %s970_s6 = scalar_lea.hbm %s1492_s2, 2048  ;;  %p972_p13 = pneg %p1246_p11 }
  0x1a   : > { %p971_p12 = scmp.ne.s32.totalorder %s1492_s2, %s970_s6  ;;  %p977_p5 = scmp.lt.u32.totalorder %s970_s6, %s1492_s2 }
  0x1c   : > { %p973_p0 = pnand %p972_p13, %p971_p12 }
  0x1e   : > { %p974_p3 = pneg %p973_p0 }
  0x20   : > { %p979_p7 = pnand %p977_p5, %p974_p3 }
  0x22   : > { %982 = shalt.err (!%p979_p7)
}
  0x23   : > { %s983_s11 = scalar_lea.vmem %s177_s27, 2048  ;;  %p991_p2 = scmp.lt.s32.totalorder %s177_s27, %s177_s27 }
  0x24   : > { %p984_p9 = scmp.ne.s32.totalorder %s177_s27, %s983_s11  ;;  %p992_p6 = scmp.lt.s32.totalorder %s983_s11, %s983_s11 }
  0x26   : > { %p986_p10 = pnand %p984_p9, %p972_p13  ;;  %p993_p4 = por %p992_p6, %p991_p2 }
  0x28   : > { %p987_p1 = pneg %p986_p10 }
  0x2a   : > { %p994_p8 = pnand %p993_p4, %p987_p1 }
  0x2c   : > { %997 = shalt.err (!%p994_p8)
}
  0x2d   : > { %s1151_s12 = smov 128   ;;  %s1152_s13 = smov 8  }
  0x2e   : > { %876 = dma.hbm_to_vmem [thread:$0]  (!%p1246_p11), %s1492_s2, 2048, %s177_s27, [#allocation8], %s1151_s12, %s1151_s12, %s1152_s13  }
  0x2f   : > { %p37_p1 = scmp.ge.s32.totalorder %s35_s29, 2  ;;  %s44_s26 = sadd.s32 1, %s1136_s17 }
  0x30   : > { %p51_p2 = scmp.ne.s32.totalorder %s1136_s17, %s1132_s16  ;;  %p52_p4 = scmp.eq.s32.totalorder %s1148_s20, 0 }
  0x31   : > { %s1516_s29 = smov (%p37_p1, %s35_s29), 0  ;;  %p1495_p8 = scmp.eq.s32.totalorder %s1218_s21, 1 }
  0x32   : > { %1493 = sst [smem:[#allocation15_spill]] %s1516_s29  ;;  %p1273_p6 = por %p52_p4, %p51_p2 }
  0x33   : > { %p1279_p10 = por %p1495_p8, %p51_p2  ;;  %s39_s5 = ssub.s32 %s1144_s19, %s1516_s29 }
  0x34   : > { %p889_p11 = scmp.lt.s32.totalorder %s1148_s20, 2  ;;  %p42_p12 = scmp.eq.s32.totalorder %s39_s5, 0 }
  0x35   : > { %s1496_s28 = scalar_select %p1279_p10, 1, 0 }
  0x36   : > { %s1287_s27 = sand.u32 1, %s1136_s17   ;;  %s763_s8 = sshll.u32 %s1144_s19, 11 }
  0x37   : > { %s734_s6 = sshll.u32 %s1287_s27, 7  ;;  %s1498_s0 = sld [smem:[#allocation17_spill]] }
  0x38   : > { %s1291_s7 = scalar_select %p42_p12, %s1136_s17, %s44_s26  }
  0x39   : > { %s197_s12 = scalar_lea.vmem [#allocation4], %s734_s6  ;;  %p1303_p13 = pnand %p889_p11, %p1273_p6 }
  0x3a   : > { %1497 = sst [smem:[#allocation16_spill]] %s1291_s7  ;;  %s206_s13 = sshll.u32 %s197_s12, 4  ;;  %s1299_s13 = int_to_ptr.vmem [resolvable:$true] %s206_s13 }
  0x3b   : > { %s194_s26 = scalar_lea.sflag [#allocation5], %s1287_s27  ;;  %p1000_p3 = pneg %p1303_p13 }
  0x3d   : > { %s1297_s11 = scalar_lea.hbm %s1498_s0, %s763_s8  ;;  %s1003_s30 = scalar_lea.hbm %s1498_s0, 4096 }
  0x3e   : > { %s998_s5 = scalar_lea.hbm %s1297_s11, 2048  ;;  %p1004_p9 = scmp.lt.u32.totalorder %s1297_s11, %s1498_s0 }
  0x3f   : > { %p999_p0 = scmp.ne.s32.totalorder %s1297_s11, %s998_s5  ;;  %p1005_p1 = scmp.lt.u32.totalorder %s1003_s30, %s998_s5 }
  0x40   : > { %p1007_p4 = scmp.lt.u32.totalorder %s998_s5, %s1297_s11 }
  0x41   : > { %p1001_p5 = pnand %p1000_p3, %p999_p0  ;;  %p1006_p2 = por %p1005_p1, %p1004_p9 }
  0x43   : > { %p1002_p7 = pneg %p1001_p5  ;;  %p1008_p6 = por %p1007_p4, %p1006_p2 }
  0x45   : > { %p1009_p8 = pnand %p1008_p6, %p1002_p7 }
  0x47   : > { %1012 = shalt.err (!%p1009_p8)
}
  0x48   : > { %s1013_s12 = scalar_lea.vmem %s1299_s13, 2048  ;;  %s1153_s6 = smov [#allocation4]  }
  0x49   : > { %p1014_p11 = scmp.ne.s32.totalorder %s1299_s13, %s1013_s12  ;;  %s1018_s8 = sshll.u32 %s1153_s6, 4  ;;  %s1019_s8 = int_to_ptr.vmem [resolvable:$false] %s1018_s8 }
  0x4a   : > { %s1020_s9 = scalar_lea.vmem %s1019_s8, 4096  ;;  %p1021_p5 = scmp.lt.s32.totalorder %s1299_s13, %s1019_s8 }
  0x4b   : > { %p1016_p12 = pnand %p1014_p11, %p1000_p3  ;;  %p1022_p9 = scmp.lt.s32.totalorder %s1020_s9, %s1013_s12 }
  0x4d   : > { %p1017_p0 = pneg %p1016_p12  ;;  %p1023_p1 = por %p1022_p9, %p1021_p5 }
  0x4f   : > { %p1024_p2 = pnand %p1023_p1, %p1017_p0 }
  0x51   : > { %1027 = shalt.err (!%p1024_p2)
}
  0x52   : > { %s1154_s5 = smov 64   ;;  %s1155_s30 = smov 4  }
  0x53   : > { %880 = dma.hbm_to_vmem [thread:$0]  (!%p1303_p13), %s1297_s11, 2048, %s1299_s13, %s194_s26, %s1154_s5, %s1154_s5, %s1155_s30  }
  0x54   : > { %s737_s10 = sshll.u32 %s1287_s27, 1  ;;  %s764_s6 = sshll.u32 %s1144_s19, 5 }
  0x55   : > { %s1341_s9 = scalar_lea.hbm %s1477_s1, %s764_s6  ;;  %s220_s22 = scalar_lea.vmem [#allocation7], %s737_s10 }
  0x56   : > { %s230_s0 = sshll.u32 %s220_s22, 4  ;;  %s1500_s2 = sand.u32 1, %s1148_s20   ;;  %s231_s0 = int_to_ptr.vmem [resolvable:$true] %s230_s0 }
  0x57   : > { %s217_s29 = scalar_lea.sflag [#allocation8], %s1500_s2  ;;  %s1028_s7 = scalar_lea.hbm %s1341_s9, 32 }
  0x58   : > { %p1029_p7 = scmp.ne.s32.totalorder %s1341_s9, %s1028_s7  ;;  %s1033_s13 = scalar_lea.hbm %s1477_s1, 64 }
  0x59   : > { %p1034_p8 = scmp.lt.u32.totalorder %s1341_s9, %s1477_s1  ;;  %p1035_p11 = scmp.lt.u32.totalorder %s1033_s13, %s1028_s7 }
  0x5a   : > { %p1031_p4 = pnand %p1029_p7, %p1000_p3  ;;  %p1037_p0 = scmp.lt.u32.totalorder %s1028_s7, %s1341_s9 }
  0x5b   : > { %p1036_p12 = por %p1035_p11, %p1034_p8 }
  0x5c   : > { %p1032_p6 = pneg %p1031_p4 }
  0x5d   : > { %p1038_p5 = por %p1037_p0, %p1036_p12 }
  0x5f   : > { %p1039_p9 = pnand %p1038_p5, %p1032_p6 }
  0x61   : > { %1042 = shalt.err (!%p1039_p9)
}
  0x62   : > { %s1043_s2 = scalar_lea.vmem %s231_s0, 32  ;;  %s1156_s22 = smov [#allocation7]  }
  0x63   : > { %p1044_p1 = scmp.ne.s32.totalorder %s231_s0, %s1043_s2  ;;  %s1048_s30 = sshll.u32 %s1156_s22, 4  ;;  %s1049_s30 = int_to_ptr.vmem [resolvable:$false] %s1048_s30 }
  0x64   : > { %s1050_s10 = scalar_lea.vmem %s1049_s30, 64  ;;  %p1051_p4 = scmp.lt.s32.totalorder %s231_s0, %s1049_s30 }
  0x65   : > { %p1046_p2 = pnand %p1044_p1, %p1000_p3  ;;  %p1052_p10 = scmp.lt.s32.totalorder %s1050_s10, %s1043_s2 }
  0x67   : > { %p1047_p7 = pneg %p1046_p2  ;;  %p1053_p8 = por %p1052_p10, %p1051_p4 }
  0x69   : > { %p1054_p11 = pnand %p1053_p8, %p1047_p7 }
  0x6b   : > { %1057 = shalt.err (!%p1054_p11)
}
  0x6c   : > { %883 = dma.hbm_to_vmem [thread:$0]  (!%p1303_p13), %s1341_s9, 32, %s231_s0, %s217_s29  }
  0x6d   : > { %p1501_p6 = scmp.ne.s32.totalorder %s1490_s25, 0 }
  0x6e   : > { %s1367_s7 = sand.u32 (!%p1501_p6), 1, %s1132_s16   ;;  %p1502_p10 = scmp.ne.s32.totalorder (!%p1501_p6), %s1488_s23, 0 }
  0x6f   : > { %239 = sbr.rel (%p1501_p6) target bundleno = 821 (0x335), region = 36  ;;  %s741_s6 = sshll.u32 (!%p1501_p6), %s1367_s7, 7 }
  0x70   : > { %s242_s8 = scalar_lea.sflag (!%p1501_p6), [#allocation5], %s1367_s7  ;;  %s1371_s12 = scalar_lea.vmem (!%p1501_p6), [#allocation4], %s741_s6 }
  0x76   : > { %1111 = dma.done.wait (%p1502_p10), %s242_s8, 2048  }
  0x77   : > { %1113 = vsyncadd (%p1502_p10), %s242_s8, 4294965248  ;;  %s250_s0 = sand.u32 1, %s1218_s21   ;;  %s742_s25 = sshll.u32 %s1367_s7, 1 }
  0x78   : > { %s251_s29 = scalar_lea.sflag [#allocation8], %s250_s0  ;;  %s254_s14 = scalar_lea.vmem [#allocation7], %s742_s25 }
  0x79   : > { %1115 = dma.done.wait (%p1502_p10), %s251_s29, 32  }
  0x7a   : > { %1117 = vsyncadd (%p1502_p10), %s251_s29, 4294967264  ;;  %p1503_p13 = scmp.eq.s32.totalorder %s1218_s21, 0 }
  0x7c   : > { %1119 = dma.done.wait (%p1503_p13), [#allocation8], 2048   ;;  %p1504_p3 = pmov %p1503_p13 }
  0x7d   : > { %v300_v0 = vlaneseq  ;;  %vm295_vm0 = vcmask 0   ;;  %v1157_v1 = vmov 0.0   ;;  %vm483_vm1 = vcmask 1040384   ;;  %v297_v5 = vld [vmem:[%s254_s14] sm:$0x3]  ;;  %v952_v12 = vld [vmem:[%s1371_s12 + $0x48] sm:$0xff]  }
  0x7e   : > { %1121 = vsyncadd (%p1504_p3), [#allocation8], 4294965248  ;;  %296 = vst.msk [vmem:[#allocation3] sm:$0x1] %vm295_vm0, %v1157_v1  ;;  %v950_v8 = vld [vmem:[%s1371_s12 + $0x40] sm:$0xff]   ;;  %v953_v13 = vld [vmem:[%s1371_s12 + $0x8] sm:$0xff]  }
  0x7f   : > { %294 = vst [vmem:[#allocation2] sm:$0x1] %v1157_v1  ;;  %v1390_v2 = vshrl.u32 %v300_v0, 7  ;;  %v951_v9 = vld [vmem:[%s1371_s12] sm:$0xff]   ;;  %765 = vmatprep.subr.bf16.mxu0 %v950_v8  ;;  %v954_v16 = vld [vmem:[%s1371_s12 + $0x50] sm:$0xff]   ;;  %v956_v18 = vld [vmem:[%s1371_s12 + $0x58] sm:$0xff]  }
  0x80   : > { %766 = vmatpush3.bf16.msra.mxu0 %v951_v9  ;;  %v955_v17 = vld [vmem:[%s1371_s12 + $0x10] sm:$0xff]   ;;  %v957_v19 = vld [vmem:[%s1371_s12 + $0x18] sm:$0xff]   ;;  %v958_v20 = vld [vmem:[%s1371_s12 + $0x60] sm:$0xff]   ;;  %v1158_v25 = vmov 0   ;;  %v1159_v33 = vmov 0.0|0.0   ;;  %vm1160_vm2 = vmmov 0  }
  0x81   : > { %v302_v3 = vsub.s32 0, %v1390_v2  ;;  %v306_v4 = vsub.s32 1, %v1390_v2  ;;  %767 = vmatprep.subr.bf16.mxu0 %v952_v12  ;;  %v959_v21 = vld [vmem:[%s1371_s12 + $0x20] sm:$0xff]   ;;  %v960_v22 = vld [vmem:[%s1371_s12 + $0x68] sm:$0xff]   ;;  %v962_v24 = vld [vmem:[%s1371_s12 + $0x70] sm:$0xff]   ;;  %949 = vset.pattern.permute.xlu0 %v1158_v25  ;;  %s760_s9 = sshll.u32 %s1140_s18, 4 }
  0x82   : > { %v961_v23 = vld [vmem:[%s1371_s12 + $0x28] sm:$0xff]   ;;  %v963_v26 = vld [vmem:[%s1371_s12 + $0x30] sm:$0xff]   ;;  %v964_v27 = vld [vmem:[%s1371_s12 + $0x78] sm:$0xff]   ;;  %839 = vmatprep.subr.bf16.mxu1 %v1159_v33  ;;  %836 = vmatprep.mubr.msk.f32.mxu1 %vm1160_vm2, %v1157_v1  ;;  %s286_s27 = scalar_lea.vmem [#allocation10], %s1367_s7  ;;  %s1427_s5 = scalar_lea.hbm %s1480_s4, %s760_s9 }
  0x83   : > { %v303_v6 = vrot.slane %v297_v5, %v302_v3  ;;  %v307_v7 = vrot.slane %v297_v5, %v306_v4  ;;  %v965_v28 = vld [vmem:[%s1371_s12 + $0x38] sm:$0xff]   ;;  %v509_v30 = vld [vmem:[#allocation9] sm:$0xff]  ;;  %v510_v31 = vld [vmem:[#allocation9 + $0x8] sm:$0xff]  ;;  %s617_s11 = sshll.u32 %s286_s27, 4  ;;  %s605_s2 = scalar_lea.sflag [#allocation6], %s1367_s7  ;;  %s1429_s11 = int_to_ptr.vmem [resolvable:$true] %s617_s11 }
  0x84   : > { %768 = vmatpush3.bf16.msra.mxu0 %v953_v13  ;;  %v511_v32 = vld [vmem:[#allocation9 + $0x10] sm:$0xff]  ;;  %v840_v34 = vpack.c.bf16 %v510_v31, %v509_v30  ;;  %v512_v35 = vld [vmem:[#allocation9 + $0x18] sm:$0xff]  ;;  %v513_v37 = vld [vmem:[#allocation9 + $0x20] sm:$0xff]  ;;  %s1058_s22 = scalar_lea.vmem %s1429_s11, 16  ;;  %p1505_p0 = scmp.ne.s32.totalorder %s1496_s28, 0 }
  0x85   : > { %v484_v10 = vsel %vm483_vm1, %v303_v6, 0.0  ;;  %v485_v11 = vsel %vm483_vm1, %v307_v7, 0.0  ;;  %v311_v14 = vpack.c.bf16 %v307_v7, %v307_v7  ;;  %769 = vmatprep.subr.bf16.mxu0 %v954_v16  ;;  %v310_v29 = vpack.c.bf16 %v303_v6, %v303_v6  ;;  %v514_v38 = vld [vmem:[#allocation9 + $0x28] sm:$0xff]  ;;  %v515_v40 = vld [vmem:[#allocation9 + $0x30] sm:$0xff]  ;;  %v516_v41 = vld [vmem:[#allocation9 + $0x38] sm:$0xff]  ;;  %p1059_p12 = scmp.ne.s32.totalorder %s1429_s11, %s1058_s22  ;;  %s1161_s18 = smov [#allocation10]  }
  0x86   : > { %v486_v15 = vadd.f32 %v485_v11, %v484_v10  ;;  %841 = vmatpush3.bf16.msra.mxu1 %v840_v34  ;;  %v843_v36 = vpack.c.bf16 %v512_v35, %v511_v32  ;;  %v846_v39 = vpack.c.bf16 %v514_v38, %v513_v37  ;;  %v849_v42 = vpack.c.bf16 %v516_v41, %v515_v40  ;;  %v517_v43 = vld [vmem:[#allocation9 + $0x40] sm:$0xff]  ;;  %v518_v44 = vld [vmem:[#allocation9 + $0x48] sm:$0xff]  ;;  %v519_v45 = vld [vmem:[#allocation9 + $0x50] sm:$0xff]  ;;  %s1062_s30 = sshll.u32 %s1161_s18, 4  ;;  %s1063_s30 = int_to_ptr.vmem [resolvable:$false] %s1062_s30 }
  0x87   : > { %472 = vmatprep.mubr.bf16.mxu0 %v311_v14  ;;  %842 = vmatprep.subr.bf16.mxu1 %v1159_v33  ;;  %v852_v46 = vpack.c.bf16 %v518_v44, %v517_v43  ;;  %v520_v47 = vld [vmem:[#allocation9 + $0x58] sm:$0xff]  ;;  %v521_v49 = vld [vmem:[#allocation9 + $0x60] sm:$0xff]  ;;  %v522_v50 = vld [vmem:[#allocation9 + $0x68] sm:$0xff]  ;;  %p1060_p5 = pnand %p1059_p12, %p1505_p0  ;;  %s1064_s10 = scalar_lea.vmem %s1063_s30, 32 }
  0x88   : > { %487 = vadd.xlane.f32.xlu0 %v486_v15  ;;  %770 = vmatpush3.bf16.msra.mxu0 %v955_v17  ;;  %v855_v48 = vpack.c.bf16 %v520_v47, %v519_v45  ;;  %v858_v51 = vpack.c.bf16 %v522_v50, %v521_v49  ;;  %v482_v52 = vld [vmem:[#allocation3] sm:$0x1]  ;;  %v523_v57 = vld [vmem:[#allocation9 + $0x70] sm:$0xff]  ;;  %v298_v62 = vld [vmem:[#allocation2] sm:$0x1]  ;;  %p1065_p1 = scmp.lt.s32.totalorder %s1429_s11, %s1063_s30  ;;  %p1066_p2 = scmp.lt.s32.totalorder %s1064_s10, %s1058_s22 }
  0x89   : > { %771 = vmatprep.subr.bf16.mxu0 %v956_v18  ;;  %v524_v58 = vld [vmem:[#allocation9 + $0x78] sm:$0xff]  ;;  %p1061_p9 = pneg %p1060_p5 }
  0x8a   : > { %844 = vmatpush3.bf16.msra.mxu1 %v843_v36  ;;  %v861_v60 = vpack.c.bf16 %v524_v58, %v523_v57  ;;  %v525_v1 = vld [vmem:[%s1479_s3] sm:$0x1]  ;;  %p1067_p7 = por %p1066_p2, %p1065_p1 }
  0x8b   : > { %845 = vmatprep.subr.bf16.mxu1 %v1159_v33 }
  0x8c   : > { %772 = vmatpush3.bf16.msra.mxu0 %v957_v19  ;;  %p1068_p4 = pnand %p1067_p7, %p1061_p9 }
  0x8d   : > { %773 = vmatprep.subr.bf16.mxu0 %v958_v20 }
  0x8e   : > { %847 = vmatpush3.bf16.msra.mxu1 %v846_v39 }
  0x8f   : > { %848 = vmatprep.subr.bf16.mxu1 %v1159_v33 }
  0x90   : > { %774 = vmatpush3.bf16.msra.mxu0 %v959_v21 }
  0x91   : > { %775 = vmatprep.subr.bf16.mxu0 %v960_v22 }
  0x92   : > { %850 = vmatpush3.bf16.msra.mxu1 %v849_v42 }
  0x93   : > { %851 = vmatprep.subr.bf16.mxu1 %v1159_v33 }
  0x94   : > { %776 = vmatpush3.bf16.msra.mxu0 %v961_v23 }
  0x95   : > { %777 = vmatprep.subr.bf16.mxu0 %v962_v24 }
  0x96   : > { %853 = vmatpush3.bf16.msra.mxu1 %v852_v46 }
  0x97   : > { %854 = vmatprep.subr.bf16.mxu1 %v1159_v33 }
  0x98   : > { %778 = vmatpush3.bf16.msra.mxu0 %v963_v26 }
  0x99   : > { %779 = vmatprep.subr.bf16.mxu0 %v964_v27 }
  0x9a   : > { %856 = vmatpush3.bf16.msra.mxu1 %v855_v48 }
  0x9b   : > { %857 = vmatprep.subr.bf16.mxu1 %v1159_v33 }
  0x9c   : > { %780 = vmatpush3.bf16.msra.mxu0 %v965_v28 }
  0x9e   : > { %859 = vmatpush3.bf16.msra.mxu1 %v858_v51 }
  0x9f   : > { %473 = vmatmul.mubr.bf16.vlgmr.msra.gmra.mrb[0].mxu0 %v310_v29  ;;  %860 = vmatprep.subr.bf16.mxu1 %v1159_v33 }
  0xa2   : > { %862 = vmatpush3.bf16.msra.mxu1 %v861_v60 }
 0x115   : > { %v488_v53 = vpop.xlane.xlu0 %487 }
 0x116   : > { %v489_v54 = vadd.f32 %v488_v53, %v482_v52 }
 0x118   : > { %491 = vst.msk [vmem:[#allocation3] sm:$0x1] %vm295_vm0, %v489_v54 }
 0x11f   : > { %v495_v55 = vld [vmem:[#allocation3] sm:$0x1] }
 0x120   : > { %v496_v56 = vmax.f32 %v495_v55, 1e-09 }
 0x122   : > { %966 = vrcp.f32 %v496_v56 }
 0x12c   : > { %v967_v59 = vpop.eup %966 }
 0x12d   : > { %501 = vperm.xlu0 %949, %v967_v59  }
 0x172   : > { %v781_v61 = vpop.f32.mrb[0].mxu0 }
 0x173   : > { %v782_v63 = vpop.f32.mrb[1].mxu0 }
 0x174   : > { %v783_v0 = vadd.f32 %v782_v63, %v781_v61  ;;  %v784_v4 = vpop.f32.mrb[2].mxu0 }
 0x175   : > { %v785_v5 = vpop.f32.mrb[3].mxu0 }
 0x176   : > { %v480_v6 = vadd.f32 %v783_v0, %v298_v62 }
 0x178   : > { %481 = vst [vmem:[#allocation2] sm:$0x1] %v480_v6 }
 0x17f   : > { %v498_v8 = vld [vmem:[#allocation2] sm:$0x1] }
 0x1ac   : > { %v502_v7 = vpop.permute.xlu0 %501 }
 0x1ad   : > { %v507_v9 = vrot.slane %v502_v7, %v302_v3 }
 0x1af   : > { %v508_v10 = vmul.f32 %v507_v9, %v498_v8 }
 0x1b1   : > { %837 = vmatmul.mubr.f32.vlgmr.msra.gmra.mrb[0].mxu1 %v508_v10 }
 0x284   : > { %v592_v11 = vpop.f32.mrb[0].mxu1 }
 0x285   : > { %v593_v12 = vadd.f32 %v592_v11, %v525_v1  ;;  %v838_v13 = vpop.f32.mrb[1].mxu1 }
 0x287   : > { %v596_v14 = vmul.f32 %v593_v12, %v593_v12 }
 0x289   : > { %v597_v15 = vsel %vm483_vm1, %v596_v14, 0.0 }
 0x28a   : > { %598 = vadd.xlane.f32.xlu1 %v597_v15 }
 0x317   : > { %v599_v16 = vpop.xlane.xlu1 %598 }
 0x318   : > { %v600_v17 = vadd.f32 1e-09, %v599_v16 }
 0x31a   : > { %968 = vrsqrt.f32 %v600_v17 }
 0x324   : > { %v969_v2 = vpop.eup %968 }
 0x325   : > { %v602_v3 = vmul.f32 %v969_v2, %v593_v12 }
 0x327   : > { %603 = vst [vmem:[%s286_s27] sm:$0x1] %v602_v3 }
 0x328   : > { %1071 = shalt.err (!%p1068_p4)
}
 0x329   : > { %s1072_s7 = scalar_lea.hbm %s1427_s5, 16  ;;  %s1076_s12 = scalar_lea.hbm %s1480_s4, 32 }
 0x32a   : > { %p1073_p8 = scmp.ne.s32.totalorder %s1427_s5, %s1072_s7  ;;  %p1077_p10 = scmp.lt.u32.totalorder %s1427_s5, %s1480_s4 }
 0x32b   : > { %p1078_p13 = scmp.lt.u32.totalorder %s1076_s12, %s1072_s7  ;;  %p1080_p12 = scmp.lt.u32.totalorder %s1072_s7, %s1427_s5 }
 0x32c   : > { %p1074_p11 = pnand %p1073_p8, %p1505_p0 }
 0x32d   : > { %p1079_p3 = por %p1078_p13, %p1077_p10 }
 0x32e   : > { %p1075_p6 = pneg %p1074_p11 }
 0x32f   : > { %p1081_p5 = por %p1080_p12, %p1079_p3 }
 0x331   : > { %p1082_p9 = pnand %p1081_p5, %p1075_p6 }
 0x333   : > { %1085 = shalt.err (!%p1082_p9)
}
 0x334   : > { %871 = dma.vmem_to_hbm [thread:$0]  (%p1505_p0), %s1429_s11, 16, %s1427_s5, %s605_s2  }
 0x335 PF: > { %s629_s29 = sand.u32 1, %s1128_s15   ;;  %p1506_p1 = scmp.ne.s32.totalorder %s1489_s24, 0 }
 0x336   : > { %p1507_p2 = scmp.ge.s32.totalorder %s1148_s20, 2  ;;  %s630_s14 = scalar_lea.sflag [#allocation6], %s629_s29 }
 0x338   : > { %p885_p7 = pnand %p1507_p2, %p1506_p1 }
 0x33a   : > { %1123 = dma.done.wait (!%p885_p7), %s630_s14, 16  }
 0x33b   : > { %1125 = vsyncadd (!%p885_p7), %s630_s14, 4294967280  ;;  %s23_s20 = sadd.s32 1, %s1148_s20   ;;  %s1508_s28 = sld [smem:[#allocation16_spill]] }
 0x33c   : > { %p20_p4 = scmp.ge.s32.totalorder %s23_s20, 4   ;;  %s1509_s21 = sld [smem:[#allocation15_spill]] }
 0x33d   : > { %s1510_s15 = smov %s1132_s16  ;;  %s1511_s16 = smov %s1136_s17 }
 0x33e   : > { %s1513_s18 = smov %s1144_s19  ;;  %22 = sbr.rel (!%p20_p4) target bundleno = 11 (0xb), region = 106 }
 0x341   : > { %s1512_s17 = smov %s1508_s28 }
 0x342   : > { %s1514_s19 = smov %s1509_s21 }
 0x345   :  { %634 = vsyncpa [#allocation5], 1 }
 0x346   :  { %636 = vsyncpa [#allocation5 + $0x1], 1 }
 0x347   :  { %637 = vsyncpa [#allocation8], 1 }
 0x348   :  { %639 = vsyncpa [#allocation8 + $0x1], 1 }
 0x349   :  { %640 = vsyncpa [#allocation6], 1 }
 0x34a   :  { %642 = vsyncpa [#allocation6 + $0x1], 1 }

</bundles_post_ra>
